<compile_context>
chip_gen: v6e
topology: v6e:2x2x1
jax: 0.10.0
libtpu: 0.0.40
codegen_flags: <defaults>
</compile_context>

<pallas_src>
import jax
import jax.numpy as jnp
from jax.experimental import pallas as pl
from jax.experimental.pallas import tpu as pltpu


def sognn_dsbn_kernel(x_ref, w_in_ref, biases_ref, w_att_ref, w_gc_ref,
                      w_f_ref, b_f_ref, mask_ref, pool_ref, out_ref):
    # x_ref: (bt*C, F) -- bt samples' electrode rows stacked along the sublane axis.
    x = x_ref[...]

    # node embedding: one (bt*C, F) @ (F, Dh) GEMM
    h0 = jnp.dot(x, w_in_ref[...], preferred_element_type=jnp.float32) + biases_ref[0:1, :]

    # self-organized adjacency: scores for ALL row pairs in one GEMM (contracted on Dh,
    # no explicit transpose), then an additive block-diagonal mask (0 within a sample,
    # -1e30 across samples) restricts attention to each sample's own electrodes.
    q = jnp.dot(h0, w_att_ref[...], preferred_element_type=jnp.float32)
    s = jax.lax.dot_general(q, h0, (((1,), (1,)), ((), ())),
                            preferred_element_type=jnp.float32) + mask_ref[...]

    # stable row softmax; reciprocal goes to the EUP slot
    s = s - jnp.max(s, axis=-1, keepdims=True)
    e = jnp.exp(s)
    a = e * pl.reciprocal(jnp.sum(e, axis=-1, keepdims=True), approx=True)

    # graph convolution + ReLU (masked adjacency has exact zeros across samples, so
    # a @ h0 mixes only within-sample rows)
    av = jnp.dot(a, h0, preferred_element_type=jnp.float32)
    h1 = jnp.dot(av, w_gc_ref[...], preferred_element_type=jnp.float32) + biases_ref[1:2, :]
    h1 = jnp.maximum(h1, 0.0)

    # per-sample mean readout over electrodes as a tiny pooling GEMM: (bt, bt*C) @ (bt*C, Dh)
    pooled = jnp.dot(pool_ref[...], h1, preferred_element_type=jnp.float32)

    # feature head (DSBN affine already folded into w_f / b_f in the wrapper), ReLU
    fea = jnp.dot(pooled, w_f_ref[...], preferred_element_type=jnp.float32) + b_f_ref[...]
    out_ref[...] = jnp.maximum(fea, 0.0)


def eeg_cd_forward(x, params, domain="src", bt=8):
    """Pallas implementation of EEG_CD.forward(x, domain) -> (B, d_f) features.

    bt = samples per grid step (8 -> M=128 rows for C=16, good for v5e; use 16 on v6e/v7x).
    """
    B, C, F = x.shape
    Dh = params["w_in"].shape[1]
    d_f = params["w_f"].shape[1]

    gamma = params["gamma_src"] if domain == "src" else params["gamma_tar"]   # (1, Dh)
    beta = params["beta_src"] if domain == "src" else params["beta_tar"]      # (1, Dh)

    # Fold eval-mode DSBN affine past the mean pool into the feature head:
    #   mean_C(relu(z)*gamma + beta) @ w_f + b_f
    # = mean_C(relu(z)) @ (diag(gamma) @ w_f) + (beta @ w_f + b_f)
    w_f_eff = params["w_f"] * gamma[0][:, None]          # (Dh, d_f)
    b_f_eff = params["b_f"] + beta @ params["w_f"]       # (1, d_f)
    biases = jnp.concatenate([params["b_in"], params["b_gc"]], axis=0)   # (2, Dh)

    # pad feature dim to a multiple of 128 -> lane-dense output stores
    d_f_pad = ((d_f + 127) // 128) * 128
    w_f_eff = jnp.pad(w_f_eff, ((0, 0), (0, d_f_pad - d_f)))
    b_f_eff = jnp.pad(b_f_eff, ((0, 0), (0, d_f_pad - d_f)))

    # pad batch to a multiple of bt and stack samples along rows (layout plumbing in XLA)
    n_blocks = (B + bt - 1) // bt
    B_pad = n_blocks * bt
    if B_pad != B:
        x = jnp.pad(x, ((0, B_pad - B), (0, 0), (0, 0)))
    x2d = x.reshape(B_pad * C, F)

    # block-diagonal additive attention mask + per-sample mean-pooling matrix (constants,
    # identical for every grid step; Pallas keeps constant-index blocks resident)
    n = bt * C
    sample_id = jnp.arange(n, dtype=jnp.int32) // C
    attn_mask = jnp.where(sample_id[:, None] == sample_id[None, :], 0.0, -1e30
                          ).astype(jnp.float32)                                   # (n, n)
    pool = (jnp.arange(bt, dtype=jnp.int32)[:, None] == sample_id[None, :]
            ).astype(jnp.float32) / C                                             # (bt, n)

    def const_spec(shape):
        return pl.BlockSpec(shape, lambda b, _s=len(shape): (0,) * _s)

    flops_per_step = 2 * (n * F * Dh + 2 * n * Dh * Dh + 2 * n * n * Dh
                          + bt * n * Dh + bt * Dh * d_f_pad)
    bytes_accessed = 4 * (B_pad * C * F + B_pad * d_f_pad + F * Dh + 2 * Dh
                          + 2 * Dh * Dh + Dh * d_f_pad + d_f_pad + n * n + bt * n)
    cost = pl.CostEstimate(flops=n_blocks * flops_per_step,
                           transcendentals=n_blocks * (n * n + n),
                           bytes_accessed=bytes_accessed)

    out = pl.pallas_call(
        sognn_dsbn_kernel,
        out_shape=jax.ShapeDtypeStruct((B_pad, d_f_pad), jnp.float32),
        grid_spec=pltpu.PrefetchScalarGridSpec(
            num_scalar_prefetch=0,
            grid=(n_blocks,),
            in_specs=[
                pl.BlockSpec((n, F), lambda b: (b, 0)),   # x rows for this sample block
                const_spec((F, Dh)),       # w_in
                const_spec((2, Dh)),       # [b_in; b_gc]
                const_spec((Dh, Dh)),      # w_att
                const_spec((Dh, Dh)),      # w_gc
                const_spec((Dh, d_f_pad)), # w_f (gamma folded, lane-padded)
                const_spec((1, d_f_pad)),  # b_f (beta folded, lane-padded)
                const_spec((n, n)),        # additive block-diagonal attention mask
                const_spec((bt, n)),       # mean-pooling matrix
            ],
            out_specs=pl.BlockSpec((bt, d_f_pad), lambda b: (b, 0)),
        ),
        compiler_params=pltpu.CompilerParams(dimension_semantics=("parallel",)),
        cost_estimate=cost,
    )(x2d, params["w_in"], biases, params["w_att"], params["w_gc"],
      w_f_eff, b_f_eff, attn_mask, pool)

    return out[:B, :d_f]


def reference_forward(x, params, domain="src"):
    """Plain-JAX reference for correctness checking (unfolded, per-sample math)."""
    gamma = params["gamma_src"] if domain == "src" else params["gamma_tar"]
    beta = params["beta_src"] if domain == "src" else params["beta_tar"]
    h0 = jnp.einsum("bcf,fd->bcd", x, params["w_in"]) + params["b_in"]
    s = jnp.einsum("bcd,de,bge->bcg", h0, params["w_att"], h0)
    a = jax.nn.softmax(s, axis=-1)
    h1 = jnp.einsum("bcg,bgd,de->bce", a, h0, params["w_gc"]) + params["b_gc"]
    h1 = jnp.maximum(h1, 0.0)
    h1 = h1 * gamma + beta
    pooled = jnp.mean(h1, axis=1)
    fea = jnp.maximum(pooled @ params["w_f"] + params["b_f"], 0.0)
    return fea


def init_params(key, C, F, Dh, d_f):
    ks = jax.random.split(key, 10)
    # gamma/beta perturbed from the BatchNorm defaults (1, 0) so the DSBN-affine folding
    # in the wrapper is actually exercised by the correctness check.
    return {
        "w_in":  jax.random.normal(ks[0], (F, Dh), jnp.float32) * 0.1,
        "b_in":  jax.random.normal(ks[1], (1, Dh), jnp.float32) * 0.1,
        "w_att": jax.random.normal(ks[2], (Dh, Dh), jnp.float32) * 0.1,
        "w_gc":  jax.random.normal(ks[3], (Dh, Dh), jnp.float32) * 0.1,
        "b_gc":  jax.random.normal(ks[4], (1, Dh), jnp.float32) * 0.1,
        "gamma_src": 1.0 + 0.1 * jax.random.normal(ks[5], (1, Dh), jnp.float32),
        "beta_src":  0.1 * jax.random.normal(ks[6], (1, Dh), jnp.float32),
        "gamma_tar": 1.0 + 0.1 * jax.random.normal(ks[7], (1, Dh), jnp.float32),
        "beta_tar":  0.1 * jax.random.normal(ks[8], (1, Dh), jnp.float32),
        "w_f":  jax.random.normal(ks[9], (Dh, d_f), jnp.float32) * 0.1,
        "b_f":  jnp.zeros((1, d_f), jnp.float32),
    }


if __name__ == "__main__":
    # Small shapes consistent with EEG data: batch=2, 16 electrode channels, 8 band
    # features, hidden graph dim 32, feature dim d_f=64 (== fea_module.linend.in_features).
    B, C, F, Dh, d_f = 2, 16, 8, 32, 64

    key = jax.random.PRNGKey(0)
    kx, kp = jax.random.split(key)
    x = jax.random.normal(kx, (B, C, F), jnp.float32)
    params = init_params(kp, C, F, Dh, d_f)

    out_src = jax.block_until_ready(eeg_cd_forward(x, params, domain="src"))
    out_tar = jax.block_until_ready(eeg_cd_forward(x, params, domain="tar"))

    ref_src = reference_forward(x, params, domain="src")
    ref_tar = reference_forward(x, params, domain="tar")

    assert out_src.shape == (B, d_f), out_src.shape
    assert out_tar.shape == (B, d_f), out_tar.shape
    # tolerance covers the EUP approximate-reciprocal softmax denominator
    max_err = max(float(jnp.max(jnp.abs(out_src - ref_src))),
                  float(jnp.max(jnp.abs(out_tar - ref_tar))))
    assert max_err < 5e-3, f"mismatch vs reference: {max_err}"

    print("KERNEL_OK")
</pallas_src>

<mosaic_0001>
module attributes {stable_mosaic.version = 11 : i64} {
  func.func @sognn_dsbn_kernel(%arg0: i32, %arg1: memref<128x8xf32, #tpu.memory_space<vmem>>, %arg2: memref<8x32xf32, #tpu.memory_space<vmem>>, %arg3: memref<2x32xf32, #tpu.memory_space<vmem>>, %arg4: memref<32x32xf32, #tpu.memory_space<vmem>>, %arg5: memref<32x32xf32, #tpu.memory_space<vmem>>, %arg6: memref<32x128xf32, #tpu.memory_space<vmem>>, %arg7: memref<1x128xf32, #tpu.memory_space<vmem>>, %arg8: memref<128x128xf32, #tpu.memory_space<vmem>>, %arg9: memref<8x128xf32, #tpu.memory_space<vmem>>, %arg10: memref<8x128xf32, #tpu.memory_space<vmem>>) attributes {dimension_semantics = [#tpu.dimension_semantics<parallel>], iteration_bounds = array<i64: 1>, scalar_prefetch = 0 : i64, scratch_operands = 0 : i64, tpu.core_type = #tpu.core_type<tc>, window_params = [{transform_indices = @transform_0, window_bounds = array<i64: 128, 8>}, {pipeline_mode = #tpu.pipeline_mode<synchronous>, transform_indices = @transform_1, window_bounds = array<i64: 8, 32>}, {pipeline_mode = #tpu.pipeline_mode<synchronous>, transform_indices = @transform_2, window_bounds = array<i64: 2, 32>}, {pipeline_mode = #tpu.pipeline_mode<synchronous>, transform_indices = @transform_3, window_bounds = array<i64: 32, 32>}, {pipeline_mode = #tpu.pipeline_mode<synchronous>, transform_indices = @transform_4, window_bounds = array<i64: 32, 32>}, {pipeline_mode = #tpu.pipeline_mode<synchronous>, transform_indices = @transform_5, window_bounds = array<i64: 32, 128>}, {pipeline_mode = #tpu.pipeline_mode<synchronous>, transform_indices = @transform_6, window_bounds = array<i64: 1, 128>}, {pipeline_mode = #tpu.pipeline_mode<synchronous>, transform_indices = @transform_7, window_bounds = array<i64: 128, 128>}, {pipeline_mode = #tpu.pipeline_mode<synchronous>, transform_indices = @transform_8, window_bounds = array<i64: 8, 128>}, {transform_indices = @transform_9, window_bounds = array<i64: 8, 128>}]} {
    %c0 = arith.constant 0 : index
    %c0_0 = arith.constant 0 : index
    %0 = vector.load %arg1[%c0, %c0_0] : memref<128x8xf32, #tpu.memory_space<vmem>>, vector<128x8xf32>
    %c0_1 = arith.constant 0 : index
    %c0_2 = arith.constant 0 : index
    %1 = vector.load %arg2[%c0_1, %c0_2] : memref<8x32xf32, #tpu.memory_space<vmem>>, vector<8x32xf32>
    %cst = arith.constant dense<0.000000e+00> : vector<128x32xf32>
    %2 = tpu.matmul %0, %1, %cst {dimension_numbers = #tpu.dot_dimension_numbers<[1], [0], [0], [1], [0, 0, 1, 1], [], []>} : vector<128x8xf32>, vector<8x32xf32>, vector<128x32xf32> -> vector<128x32xf32>
    %c0_3 = arith.constant 0 : index
    %c0_4 = arith.constant 0 : index
    %3 = vector.load %arg3[%c0_3, %c0_4] : memref<2x32xf32, #tpu.memory_space<vmem>>, vector<1x32xf32>
    %4 = vector.broadcast %3 : vector<1x32xf32> to vector<128x32xf32>
    %5 = arith.addf %2, %4 : vector<128x32xf32>
    %c0_5 = arith.constant 0 : index
    %c0_6 = arith.constant 0 : index
    %6 = vector.load %arg4[%c0_5, %c0_6] : memref<32x32xf32, #tpu.memory_space<vmem>>, vector<32x32xf32>
    %cst_7 = arith.constant dense<0.000000e+00> : vector<128x32xf32>
    %7 = tpu.matmul %5, %6, %cst_7 {dimension_numbers = #tpu.dot_dimension_numbers<[1], [0], [0], [1], [0, 0, 1, 1], [], []>} : vector<128x32xf32>, vector<32x32xf32>, vector<128x32xf32> -> vector<128x32xf32>
    %cst_8 = arith.constant dense<0.000000e+00> : vector<128x128xf32>
    %8 = tpu.matmul %7, %5, %cst_8 {dimension_numbers = #tpu.dot_dimension_numbers<[1], [1], [0], [0], [0, 0, 1, 0], [], []>} : vector<128x32xf32>, vector<128x32xf32>, vector<128x128xf32> -> vector<128x128xf32>
    %c0_9 = arith.constant 0 : index
    %c0_10 = arith.constant 0 : index
    %9 = vector.load %arg8[%c0_9, %c0_10] : memref<128x128xf32, #tpu.memory_space<vmem>>, vector<128x128xf32>
    %10 = arith.addf %8, %9 : vector<128x128xf32>
    %cst_11 = arith.constant dense<0xFF800000> : vector<128xf32>
    %11 = vector.multi_reduction <maximumf>, %10, %cst_11 [1] : vector<128x128xf32> to vector<128xf32>
    %12 = vector.shape_cast %11 : vector<128xf32> to vector<128x1xf32>
    %13 = vector.broadcast %12 : vector<128x1xf32> to vector<128x128xf32>
    %14 = arith.subf %10, %13 : vector<128x128xf32>
    %15 = math.exp %14 : vector<128x128xf32>
    %cst_12 = arith.constant dense<0.000000e+00> : vector<128xf32>
    %16 = vector.multi_reduction <add>, %15, %cst_12 [1] : vector<128x128xf32> to vector<128xf32>
    %17 = vector.shape_cast %16 : vector<128xf32> to vector<128x1xf32>
    %18 = tpu.reciprocal %17 {approx = true} : vector<128x1xf32> -> vector<128x1xf32>
    %19 = vector.broadcast %18 : vector<128x1xf32> to vector<128x128xf32>
    %20 = arith.mulf %15, %19 : vector<128x128xf32>
    %cst_13 = arith.constant dense<0.000000e+00> : vector<128x32xf32>
    %21 = tpu.matmul %20, %5, %cst_13 {dimension_numbers = #tpu.dot_dimension_numbers<[1], [0], [0], [1], [0, 0, 1, 1], [], []>} : vector<128x128xf32>, vector<128x32xf32>, vector<128x32xf32> -> vector<128x32xf32>
    %c0_14 = arith.constant 0 : index
    %c0_15 = arith.constant 0 : index
    %22 = vector.load %arg5[%c0_14, %c0_15] : memref<32x32xf32, #tpu.memory_space<vmem>>, vector<32x32xf32>
    %cst_16 = arith.constant dense<0.000000e+00> : vector<128x32xf32>
    %23 = tpu.matmul %21, %22, %cst_16 {dimension_numbers = #tpu.dot_dimension_numbers<[1], [0], [0], [1], [0, 0, 1, 1], [], []>} : vector<128x32xf32>, vector<32x32xf32>, vector<128x32xf32> -> vector<128x32xf32>
    %c1 = arith.constant 1 : index
    %c0_17 = arith.constant 0 : index
    %24 = vector.load %arg3[%c1, %c0_17] : memref<2x32xf32, #tpu.memory_space<vmem>>, vector<1x32xf32>
    %25 = vector.broadcast %24 : vector<1x32xf32> to vector<128x32xf32>
    %26 = arith.addf %23, %25 : vector<128x32xf32>
    %cst_18 = arith.constant 0.000000e+00 : f32
    %27 = vector.broadcast %cst_18 : f32 to vector<128x32xf32>
    %28 = arith.maximumf %26, %27 : vector<128x32xf32>
    %c0_19 = arith.constant 0 : index
    %c0_20 = arith.constant 0 : index
    %29 = vector.load %arg9[%c0_19, %c0_20] : memref<8x128xf32, #tpu.memory_space<vmem>>, vector<8x128xf32>
    %cst_21 = arith.constant dense<0.000000e+00> : vector<8x32xf32>
    %30 = tpu.matmul %29, %28, %cst_21 {dimension_numbers = #tpu.dot_dimension_numbers<[1], [0], [0], [1], [0, 0, 1, 1], [], []>} : vector<8x128xf32>, vector<128x32xf32>, vector<8x32xf32> -> vector<8x32xf32>
    %c0_22 = arith.constant 0 : index
    %c0_23 = arith.constant 0 : index
    %31 = vector.load %arg6[%c0_22, %c0_23] : memref<32x128xf32, #tpu.memory_space<vmem>>, vector<32x128xf32>
    %cst_24 = arith.constant dense<0.000000e+00> : vector<8x128xf32>
    %32 = tpu.matmul %30, %31, %cst_24 {dimension_numbers = #tpu.dot_dimension_numbers<[1], [0], [0], [1], [0, 0, 1, 1], [], []>} : vector<8x32xf32>, vector<32x128xf32>, vector<8x128xf32> -> vector<8x128xf32>
    %c0_25 = arith.constant 0 : index
    %c0_26 = arith.constant 0 : index
    %33 = vector.load %arg7[%c0_25, %c0_26] : memref<1x128xf32, #tpu.memory_space<vmem>>, vector<1x128xf32>
    %34 = vector.broadcast %33 : vector<1x128xf32> to vector<8x128xf32>
    %35 = arith.addf %32, %34 : vector<8x128xf32>
    %cst_27 = arith.constant 0.000000e+00 : f32
    %36 = vector.broadcast %cst_27 : f32 to vector<8x128xf32>
    %37 = arith.maximumf %35, %36 : vector<8x128xf32>
    %c0_28 = arith.constant 0 : index
    %c0_29 = arith.constant 0 : index
    %38 = vector.load %arg10[%c0_28, %c0_29] : memref<8x128xf32, #tpu.memory_space<vmem>>, vector<8x128xf32>
    tpu.vector_store %arg10[%c0_28, %c0_29], %37 {strides = array<i32>} : memref<8x128xf32, #tpu.memory_space<vmem>>, vector<8x128xf32>,
    return
  }
  func.func @transform_0(%arg0: i32) -> (i32, i32) {
    %c0_i32 = arith.constant 0 : i32
    %c0_i32_0 = arith.constant 0 : i32
    return %arg0, %c0_i32 : i32, i32
  }
  func.func @transform_1(%arg0: i32) -> (i32, i32) {
    %c0_i32 = arith.constant 0 : i32
    %c0_i32_0 = arith.constant 0 : i32
    %c0_i32_1 = arith.constant 0 : i32
    return %c0_i32, %c0_i32_0 : i32, i32
  }
  func.func @transform_2(%arg0: i32) -> (i32, i32) {
    %c0_i32 = arith.constant 0 : i32
    %c0_i32_0 = arith.constant 0 : i32
    %c0_i32_1 = arith.constant 0 : i32
    return %c0_i32, %c0_i32_0 : i32, i32
  }
  func.func @transform_3(%arg0: i32) -> (i32, i32) {
    %c0_i32 = arith.constant 0 : i32
    %c0_i32_0 = arith.constant 0 : i32
    %c0_i32_1 = arith.constant 0 : i32
    return %c0_i32, %c0_i32_0 : i32, i32
  }
  func.func @transform_4(%arg0: i32) -> (i32, i32) {
    %c0_i32 = arith.constant 0 : i32
    %c0_i32_0 = arith.constant 0 : i32
    %c0_i32_1 = arith.constant 0 : i32
    return %c0_i32, %c0_i32_0 : i32, i32
  }
  func.func @transform_5(%arg0: i32) -> (i32, i32) {
    %c0_i32 = arith.constant 0 : i32
    %c0_i32_0 = arith.constant 0 : i32
    %c0_i32_1 = arith.constant 0 : i32
    return %c0_i32, %c0_i32_0 : i32, i32
  }
  func.func @transform_6(%arg0: i32) -> (i32, i32) {
    %c0_i32 = arith.constant 0 : i32
    %c0_i32_0 = arith.constant 0 : i32
    %c0_i32_1 = arith.constant 0 : i32
    return %c0_i32, %c0_i32_0 : i32, i32
  }
  func.func @transform_7(%arg0: i32) -> (i32, i32) {
    %c0_i32 = arith.constant 0 : i32
    %c0_i32_0 = arith.constant 0 : i32
    %c0_i32_1 = arith.constant 0 : i32
    return %c0_i32, %c0_i32_0 : i32, i32
  }
  func.func @transform_8(%arg0: i32) -> (i32, i32) {
    %c0_i32 = arith.constant 0 : i32
    %c0_i32_0 = arith.constant 0 : i32
    %c0_i32_1 = arith.constant 0 : i32
    return %c0_i32, %c0_i32_0 : i32, i32
  }
  func.func @transform_9(%arg0: i32) -> (i32, i32) {
    %c0_i32 = arith.constant 0 : i32
    %c0_i32_0 = arith.constant 0 : i32
    return %arg0, %c0_i32 : i32, i32
  }
}

</mosaic_0001>

<bundles_post_ra>
// kernel: tpu_custom_call.1
= control target key start
LH: loop header
LB: loop body
LE: loop exit
PB: predicated region body
PF: predicated region fallthrough
CT: control target
= control target key end

     0   :  { %14 = vsyncpa [#allocation3], 0  ;;  %s2507_s0 = inlined_call_operand.vmem [shape: f32[128,8], index: 0, kind: input, shape index: {}]   ;;  %s2508_s1 = inlined_call_operand.vmem [shape: f32[8,32], index: 1, kind: input, shape index: {}]   ;;  %s2509_s2 = inlined_call_operand.vmem [shape: f32[2,32], index: 2, kind: input, shape index: {}]   ;;  %s2510_s3 = inlined_call_operand.hbm [shape: f32[32,32], index: 3, kind: input, shape index: {}]   ;;  %s2511_s4 = inlined_call_operand.hbm [shape: f32[32,32], index: 4, kind: input, shape index: {}]   ;;  %s2512_s5 = inlined_call_operand.hbm [shape: f32[32,128], index: 5, kind: input, shape index: {}]   ;;  %s2513_s6 = inlined_call_operand.vmem [shape: f32[1,128], index: 6, kind: input, shape index: {}]   ;;  %s2514_s7 = inlined_call_operand.vmem [shape: f32[128,128], index: 7, kind: input, shape index: {}]   ;;  %s2515_s8 = inlined_call_operand.vmem [shape: f32[8,128], index: 8, kind: input, shape index: {}]   ;;  %s2516_s9 = inlined_call_operand.hbm [shape: f32[8,128], index: 9, kind: output, shape index: {}]  }
   0x1   :  { %15 = vsyncpa [#allocation6], 0 }
   0x2   :  { %16 = vsyncpa [#allocation4], 0  ;;  %s2010_s30 = smov [#allocation5]   ;;  %s2011_s11 = smov [#allocation2]  }
   0x3   :  { %s40_s10 = sshll.u32 %s2010_s30, 4  ;;  %s28_s12 = sshll.u32 %s2011_s11, 4  ;;  %s41_s10 = int_to_ptr.vmem [resolvable:$true] %s40_s10  ;;  %s29_s12 = int_to_ptr.vmem [resolvable:$true] %s28_s12 }
   0x4   :  { %s1932_s13 = scalar_lea.vmem %s41_s10, 512  ;;  %p1937_p1 = scmp.lt.s32.totalorder %s41_s10, %s41_s10 }
   0x5   :  { %p1933_p0 = scmp.ne.s32.totalorder %s41_s10, %s1932_s13  ;;  %p1938_p2 = scmp.lt.s32.totalorder %s1932_s13, %s1932_s13 }
   0x7   :  { %p1939_p3 = por %p1938_p2, %p1937_p1 }
   0x9   :  { %p1940_p4 = pnand %p1939_p3, %p1933_p0 }
   0xb   :  { %1943 = shalt.err (!%p1940_p4)
}
   0xc   :  { %s2012_s14 = smov 128   ;;  %s2013_s15 = smov 8  }
   0xd   :  { %46 = dma.hbm_to_vmem [thread:$0]  %s2511_s4, 512, %s41_s10, [#allocation6], %s2012_s14, %s2012_s14, %s2013_s15  }
   0xe   :  { %s1952_s18 = scalar_lea.vmem %s29_s12, 512  ;;  %p1957_p6 = scmp.lt.s32.totalorder %s29_s12, %s29_s12 }
   0xf   :  { %p1953_p5 = scmp.ne.s32.totalorder %s29_s12, %s1952_s18  ;;  %p1958_p7 = scmp.lt.s32.totalorder %s1952_s18, %s1952_s18 }
  0x11   :  { %p1959_p8 = por %p1958_p7, %p1957_p6 }
  0x13   :  { %p1960_p9 = pnand %p1959_p8, %p1953_p5 }
  0x15   :  { %1963 = shalt.err (!%p1960_p9)
}
  0x16   :  { %34 = dma.hbm_to_vmem [thread:$0]  %s2510_s3, 512, %s29_s12, [#allocation3], %s2012_s14, %s2012_s14, %s2013_s15  }
  0x17   :  { %s2014_s21 = smov [#allocation7]  }
  0x18   :  { %s52_s22 = sshll.u32 %s2014_s21, 4  ;;  %s53_s22 = int_to_ptr.vmem [resolvable:$true] %s52_s22 }
  0x19   :  { %s1972_s23 = scalar_lea.vmem %s53_s22, 512  ;;  %p1977_p11 = scmp.lt.s32.totalorder %s53_s22, %s53_s22 }
  0x1a   :  { %p1973_p10 = scmp.ne.s32.totalorder %s53_s22, %s1972_s23  ;;  %p1978_p12 = scmp.lt.s32.totalorder %s1972_s23, %s1972_s23 }
  0x1c   :  { %p1979_p13 = por %p1978_p12, %p1977_p11 }
  0x1e   :  { %p1980_p0 = pnand %p1979_p13, %p1973_p10 }
  0x20   :  { %1983 = shalt.err (!%p1980_p0)
}
  0x21   :  { %58 = dma.hbm_to_vmem [thread:$0]  %s2512_s5, 512, %s53_s22, [#allocation6], %s2012_s14, %s2012_s14, %s2013_s15  }
  0x22   :  { %2004 = dma.done.wait [#allocation3], 512  }
  0x23   :  { %2005 = vsyncadd [#allocation3], 4294966784 }
  0x24   :  { %2006 = dma.done.wait [#allocation6], 1024  }
  0x25   :  { %2007 = vsyncadd [#allocation6], 4294966272  ;;  %vm96_vm0 = vcmask 64512   ;;  %v90_v0 = vld [vmem:[%s2508_s1] sm:$0xff]  ;;  %v75_v2 = vld [vmem:[%s2507_s0 + $0x8] sm:$0xff]  ;;  %vm294_vm1 = vcmask 261120  }
  0x26   :  { %v74_v1 = vld [vmem:[%s2507_s0] sm:$0xff]  ;;  %1604 = vmatprep.subr.mxu0 %v90_v0  ;;  %v76_v3 = vld [vmem:[%s2507_s0 + $0x10] sm:$0xff]  ;;  %v77_v4 = vld [vmem:[%s2507_s0 + $0x18] sm:$0xff]  ;;  %vm2016_vm2 = vmmov 0   ;;  %s2017_s21 = smov [#allocation8]  }
  0x27   :  { %1606 = vmatprep.mubr.msk.f32.mxu0 %vm96_vm0, %v74_v1  ;;  %1605 = vmatpush3.msra.mxu0 %v90_v0  ;;  %v78_v5 = vld [vmem:[%s2507_s0 + $0x20] sm:$0xff]  ;;  %v293_v6 = vld [vmem:[#allocation2 + $0x18] sm:$0xff]  ;;  %v79_v7 = vld [vmem:[%s2507_s0 + $0x28] sm:$0xff]  ;;  %s1367_s22 = sshll.u32 %s2017_s21, 4  ;;  %s1368_s22 = int_to_ptr.vmem [resolvable:$true] %s1367_s22 }
  0x28   :  { %1607 = vmatmul.mubr.msk.f32.vlgmr.msra.gmra.mxu0 %vm96_vm0, %v75_v2  ;;  %1630 = vmatprep.subr.mxu1 %v293_v6  ;;  %v80_v8 = vld [vmem:[%s2507_s0 + $0x30] sm:$0xff]  ;;  %v81_v9 = vld [vmem:[%s2507_s0 + $0x38] sm:$0xff]  ;;  %v82_v10 = vld [vmem:[%s2507_s0 + $0x40] sm:$0xff]  ;;  %p1989_p2 = scmp.lt.s32.totalorder %s1368_s22, %s1368_s22 }
  0x29   :  { %1609 = vmatprep.mubr.msk.f32.mxu0 %vm96_vm0, %v76_v3  ;;  %1631 = vmatpush3.msra.mxu1 %v293_v6  ;;  %v83_v11 = vld [vmem:[%s2507_s0 + $0x48] sm:$0xff]  ;;  %v84_v12 = vld [vmem:[%s2507_s0 + $0x50] sm:$0xff]  ;;  %v85_v13 = vld [vmem:[%s2507_s0 + $0x58] sm:$0xff] }
  0x2a   :  { %v86_v14 = vld [vmem:[%s2507_s0 + $0x60] sm:$0xff]  ;;  %v87_v15 = vld [vmem:[%s2507_s0 + $0x68] sm:$0xff]  ;;  %v88_v16 = vld [vmem:[%s2507_s0 + $0x70] sm:$0xff] }
  0x2b   :  { %v89_v17 = vld [vmem:[%s2507_s0 + $0x78] sm:$0xff]  ;;  %v292_v18 = vld [vmem:[#allocation2 + $0x10] sm:$0xff]  ;;  %v291_v19 = vld [vmem:[#allocation2 + $0x8] sm:$0xff] }
  0x2c   :  { %1610 = vmatmul.mubr.msk.f32.gmra.mxu0 %vm96_vm0, %v77_v4  ;;  %1632 = vmatprep.subr.mxu1 %v292_v18  ;;  %v290_v20 = vld [vmem:[#allocation2] sm:$0xff] }
  0x2d   :  { %1612 = vmatprep.mubr.msk.f32.mxu0 %vm96_vm0, %v78_v5  ;;  %1633 = vmatpush3.msra.mxu1 %v292_v18  ;;  %v1377_v22 = vld [vmem:[%s2509_s2] ss:$0 sm:$0xff] }
  0x2e   :  { %1634 = vmatprep.subr.mxu1 %v291_v19  ;;  %v492_v18 = vld [vmem:[%s2514_s7 + $0x20] sm:$0xff] }
  0x2f   :  { %1635 = vmatpush3.msra.mxu1 %v291_v19 }
  0x30   :  { %1613 = vmatmul.mubr.msk.f32.gmra.mxu0 %vm96_vm0, %v79_v7  ;;  %1636 = vmatprep.subr.mxu1 %v290_v20  ;;  %v488_v7 = vld [vmem:[%s2514_s7] sm:$0xff] }
  0x31   :  { %1615 = vmatprep.mubr.msk.f32.mxu0 %vm96_vm0, %v80_v8  ;;  %1637 = vmatpush3.msra.mxu1 %v290_v20 }
  0x34   :  { %1616 = vmatmul.mubr.msk.f32.gmra.mxu0 %vm96_vm0, %v81_v9 }
  0x35   :  { %1618 = vmatprep.mubr.msk.f32.mxu0 %vm96_vm0, %v82_v10  ;;  %v489_v10 = vld [vmem:[%s2514_s7 + $0x8] sm:$0xff] }
  0x38   :  { %1619 = vmatmul.mubr.msk.f32.gmra.mxu0 %vm96_vm0, %v83_v11 }
  0x39   :  { %1621 = vmatprep.mubr.msk.f32.mxu0 %vm96_vm0, %v84_v12  ;;  %v490_v12 = vld [vmem:[%s2514_s7 + $0x10] sm:$0xff] }
  0x3c   :  { %1622 = vmatmul.mubr.msk.f32.gmra.mxu0 %vm96_vm0, %v85_v13 }
  0x3d   :  { %1624 = vmatprep.mubr.msk.f32.mxu0 %vm96_vm0, %v86_v14 }
  0x40   :  { %1625 = vmatmul.mubr.msk.f32.gmra.mxu0 %vm96_vm0, %v87_v15 }
  0x41   :  { %1627 = vmatprep.mubr.msk.f32.mxu0 %vm96_vm0, %v88_v16  ;;  %v491_v16 = vld [vmem:[%s2514_s7 + $0x18] sm:$0xff] }
  0x44   :  { %1628 = vmatmul.mubr.msk.f32.gmra.mxu0 %vm96_vm0, %v89_v17 }
  0xe8   :  { %v1608_v21 = vpop.f32.mrf.mxu0 }
  0xe9   :  { %v2149_v25 = vadd.f32 %v1608_v21, %v1377_v22 }
  0xea   :  { %v211_v23 = vpop.f32.mrf.mxu0 }
  0xeb   :  { %v2147_v24 = vadd.f32 %v1377_v22, %v211_v23 }
  0xec   :  { %v1611_v26 = vpop.f32.mrf.mxu0 }
  0xed   :  { %1638 = vmatprep.mubr.msk.f32.mxu1 %vm294_vm1, %v2147_v24  ;;  %v2157_v29 = vadd.f32 %v1611_v26, %v1377_v22 }
  0xee   :  { %v221_v27 = vpop.f32.mrf.mxu0  ;;  %1639 = vmatmul.mubr.msk.f32.vlgmr.msra.gmra.mxu1 %vm294_vm1, %v2149_v25 }
  0xef   :  { %v2155_v28 = vadd.f32 %v1377_v22, %v221_v27 }
  0xf0   :  { %v1614_v30 = vpop.f32.mrf.mxu0 }
  0xf1   :  { %1641 = vmatprep.mubr.msk.f32.mxu1 %vm294_vm1, %v2155_v28  ;;  %v2161_v31 = vadd.f32 %v1614_v30, %v1377_v22  ;;  %v496_v30 = vld [vmem:[%s2514_s7 + $0x40] sm:$0xff] }
  0xf2   :  { %v231_v32 = vpop.f32.mrf.mxu0  ;;  %1642 = vmatmul.mubr.msk.f32.gmra.mxu1 %vm294_vm1, %v2157_v29 }
  0xf3   :  { %v2165_v33 = vadd.f32 %v1377_v22, %v231_v32 }
  0xf4   :  { %v1617_v34 = vpop.f32.mrf.mxu0 }
  0xf5   :  { %1644 = vmatprep.mubr.msk.f32.mxu1 %vm294_vm1, %v2165_v33  ;;  %v2169_v35 = vadd.f32 %v1617_v34, %v1377_v22  ;;  %v497_v34 = vld [vmem:[%s2514_s7 + $0x48] sm:$0xff] }
  0xf6   :  { %v241_v36 = vpop.f32.mrf.mxu0  ;;  %1645 = vmatmul.mubr.msk.f32.gmra.mxu1 %vm294_vm1, %v2161_v31 }
  0xf7   :  { %v2173_v37 = vadd.f32 %v1377_v22, %v241_v36  ;;  %v498_v36 = vld [vmem:[%s2514_s7 + $0x50] sm:$0xff] }
  0xf8   :  { %v1620_v38 = vpop.f32.mrf.mxu0 }
  0xf9   :  { %1647 = vmatprep.mubr.msk.f32.mxu1 %vm294_vm1, %v2173_v37  ;;  %v257_v39 = vadd.f32 %v1620_v38, %v1377_v22 }
  0xfa   :  { %v251_v40 = vpop.f32.mrf.mxu0  ;;  %1648 = vmatmul.mubr.msk.f32.gmra.mxu1 %vm294_vm1, %v2169_v35 }
  0xfb   :  { %v2179_v41 = vadd.f32 %v1377_v22, %v251_v40  ;;  %v499_v40 = vld [vmem:[%s2514_s7 + $0x58] sm:$0xff] }
  0xfc   :  { %v1623_v42 = vpop.f32.mrf.mxu0 }
  0xfd   :  { %1650 = vmatprep.mubr.msk.f32.mxu1 %vm294_vm1, %v2179_v41  ;;  %v267_v43 = vadd.f32 %v1623_v42, %v1377_v22  ;;  %v500_v42 = vld [vmem:[%s2514_s7 + $0x60] sm:$0xff] }
  0xfe   :  { %v261_v44 = vpop.f32.mrf.mxu0  ;;  %1651 = vmatmul.mubr.msk.f32.gmra.mxu1 %vm294_vm1, %v257_v39 }
  0xff   :  { %v262_v45 = vadd.f32 %v1377_v22, %v261_v44 }
 0x100   :  { %v1626_v46 = vpop.f32.mrf.mxu0 }
 0x101   :  { %1653 = vmatprep.mubr.msk.f32.mxu1 %vm294_vm1, %v262_v45  ;;  %v277_v47 = vadd.f32 %v1626_v46, %v1377_v22  ;;  %v501_v46 = vld [vmem:[%s2514_s7 + $0x68] sm:$0xff] }
 0x102   :  { %v271_v48 = vpop.f32.mrf.mxu0  ;;  %1654 = vmatmul.mubr.msk.f32.gmra.mxu1 %vm294_vm1, %v267_v43 }
 0x103   :  { %v272_v49 = vadd.f32 %v1377_v22, %v271_v48  ;;  %v502_v48 = vld [vmem:[%s2514_s7 + $0x70] sm:$0xff] }
 0x104   :  { %v1629_v50 = vpop.f32.mrf.mxu0 }
 0x105   :  { %v287_v51 = vadd.f32 %v1629_v50, %v1377_v22  ;;  %1656 = vmatprep.mubr.msk.f32.mxu1 %vm294_vm1, %v272_v49 }
 0x106   :  { %v281_v52 = vpop.f32.mrf.mxu0  ;;  %1657 = vmatmul.mubr.msk.f32.gmra.mxu1 %vm294_vm1, %v277_v47 }
 0x107   :  { %v282_v53 = vadd.f32 %v1377_v22, %v281_v52  ;;  %1662 = vmatprep.subr.msk.mxu0 %vm294_vm1, %v287_v51  ;;  %1718 = vmatprep.subr.mxu1 %v287_v51  ;;  %v493_v22 = vld [vmem:[%s2514_s7 + $0x28] sm:$0xff]  ;;  %v503_v52 = vld [vmem:[%s2514_s7 + $0x78] sm:$0xff] }
 0x108   :  { %1663 = vmatpush3.xpose.msk.msra.mxu0 %vm294_vm1, %v287_v51  ;;  %1719 = vmatpush3.msra.mxu1 %v287_v51 }
 0x109   :  { %1659 = vmatprep.mubr.msk.f32.mxu1 %vm294_vm1, %v282_v53  ;;  %1720 = vmatprep.subr.mxu1 %v282_v53 }
 0x10a   :  { %1660 = vmatmul.mubr.msk.f32.gmra.mxu1 %vm294_vm1, %v287_v51  ;;  %1664 = vmatprep.subr.msk.mxu0 %vm294_vm1, %v282_v53 }
 0x10b   :  { %1721 = vmatpush3.msra.mxu1 %v282_v53 }
 0x10c   :  { %1722 = vmatprep.subr.mxu1 %v277_v47  ;;  %1665 = vmatpush3.xpose.msk.msra.mxu0 %vm294_vm1, %v282_v53 }
 0x10d   :  { %1723 = vmatpush3.msra.mxu1 %v277_v47  ;;  %1666 = vmatprep.subr.msk.mxu0 %vm294_vm1, %v277_v47 }
 0x10e   :  { %1724 = vmatprep.subr.mxu1 %v272_v49 }
 0x10f   :  { %1725 = vmatpush3.msra.mxu1 %v272_v49 }
 0x110   :  { %1726 = vmatprep.subr.mxu1 %v267_v43  ;;  %1667 = vmatpush3.xpose.msk.msra.mxu0 %vm294_vm1, %v277_v47 }
 0x111   :  { %1727 = vmatpush3.msra.mxu1 %v267_v43  ;;  %1668 = vmatprep.subr.msk.mxu0 %vm294_vm1, %v272_v49 }
 0x112   :  { %1728 = vmatprep.subr.mxu1 %v262_v45 }
 0x113   :  { %1729 = vmatpush3.msra.mxu1 %v262_v45 }
 0x114   :  { %1730 = vmatprep.subr.mxu1 %v257_v39  ;;  %1669 = vmatpush3.xpose.msk.msra.mxu0 %vm294_vm1, %v272_v49 }
 0x115   :  { %1731 = vmatpush3.msra.mxu1 %v257_v39  ;;  %1670 = vmatprep.subr.msk.mxu0 %vm294_vm1, %v267_v43 }
 0x116   :  { %1732 = vmatprep.subr.mxu1 %v2179_v41 }
 0x117   :  { %1733 = vmatpush3.msra.mxu1 %v2179_v41 }
 0x118   :  { %1734 = vmatprep.subr.mxu1 %v2169_v35  ;;  %1671 = vmatpush3.xpose.msk.msra.mxu0 %vm294_vm1, %v267_v43 }
 0x119   :  { %1735 = vmatpush3.msra.mxu1 %v2169_v35  ;;  %1672 = vmatprep.subr.msk.mxu0 %vm294_vm1, %v262_v45 }
 0x11a   :  { %1736 = vmatprep.subr.mxu1 %v2173_v37 }
 0x11b   :  { %1737 = vmatpush3.msra.mxu1 %v2173_v37 }
 0x11c   :  { %1738 = vmatprep.subr.mxu1 %v2161_v31  ;;  %1673 = vmatpush3.xpose.msk.msra.mxu0 %vm294_vm1, %v262_v45 }
 0x11d   :  { %1739 = vmatpush3.msra.mxu1 %v2161_v31  ;;  %1674 = vmatprep.subr.msk.mxu0 %vm294_vm1, %v257_v39 }
 0x11e   :  { %1740 = vmatprep.subr.mxu1 %v2165_v33 }
 0x11f   :  { %1741 = vmatpush3.msra.mxu1 %v2165_v33 }
 0x120   :  { %1742 = vmatprep.subr.mxu1 %v2157_v29  ;;  %1675 = vmatpush3.xpose.msk.msra.mxu0 %vm294_vm1, %v257_v39 }
 0x121   :  { %1743 = vmatpush3.msra.mxu1 %v2157_v29  ;;  %1676 = vmatprep.subr.msk.mxu0 %vm294_vm1, %v2179_v41 }
 0x122   :  { %1744 = vmatprep.subr.mxu1 %v2155_v28 }
 0x123   :  { %1745 = vmatpush3.msra.mxu1 %v2155_v28 }
 0x124   :  { %1746 = vmatprep.subr.mxu1 %v2149_v25  ;;  %1677 = vmatpush3.xpose.msk.msra.mxu0 %vm294_vm1, %v2179_v41 }
 0x125   :  { %1747 = vmatpush3.msra.mxu1 %v2149_v25  ;;  %1678 = vmatprep.subr.msk.mxu0 %vm294_vm1, %v2169_v35 }
 0x126   :  { %1748 = vmatprep.subr.mxu1 %v2147_v24 }
 0x127   :  { %1749 = vmatpush3.msra.mxu1 %v2147_v24 }
 0x128   :  { %1679 = vmatpush3.xpose.msk.msra.mxu0 %vm294_vm1, %v2169_v35 }
 0x129   :  { %1680 = vmatprep.subr.msk.mxu0 %vm294_vm1, %v2173_v37 }
 0x12c   :  { %1681 = vmatpush3.xpose.msk.msra.mxu0 %vm294_vm1, %v2173_v37 }
 0x12d   :  { %1682 = vmatprep.subr.msk.mxu0 %vm294_vm1, %v2161_v31 }
 0x130   :  { %1683 = vmatpush3.xpose.msk.msra.mxu0 %vm294_vm1, %v2161_v31 }
 0x131   :  { %1684 = vmatprep.subr.msk.mxu0 %vm294_vm1, %v2165_v33 }
 0x134   :  { %1685 = vmatpush3.xpose.msk.msra.mxu0 %vm294_vm1, %v2165_v33 }
 0x135   :  { %1686 = vmatprep.subr.msk.mxu0 %vm294_vm1, %v2157_v29 }
 0x138   :  { %1687 = vmatpush3.xpose.msk.msra.mxu0 %vm294_vm1, %v2157_v29 }
 0x139   :  { %1688 = vmatprep.subr.msk.mxu0 %vm294_vm1, %v2155_v28 }
 0x13c   :  { %1689 = vmatpush3.xpose.msk.msra.mxu0 %vm294_vm1, %v2155_v28  ;;  %v495_v28 = vld [vmem:[%s2514_s7 + $0x38] sm:$0xff] }
 0x13d   :  { %1690 = vmatprep.subr.msk.mxu0 %vm294_vm1, %v2149_v25 }
 0x140   :  { %1691 = vmatpush3.xpose.msk.msra.mxu0 %vm294_vm1, %v2149_v25 }
 0x141   :  { %1692 = vmatprep.subr.msk.mxu0 %vm294_vm1, %v2147_v24 }
 0x144   :  { %1693 = vmatpush3.xpose.msk.msra.mxu0 %vm294_vm1, %v2147_v24  ;;  %v494_v24 = vld [vmem:[%s2514_s7 + $0x30] sm:$0xff] }
 0x1ae   :  { %v1640_v54 = vpop.f32.mrf.mxu1 }
 0x1b0   :  { %v409_v55 = vpop.f32.mrf.mxu1 }
 0x1b1   :  { %1694 = vmatprep.mubr.msk.f32.mxu0 %vm294_vm1, %v409_v55 }
 0x1b2   :  { %v1643_v56 = vpop.f32.mrf.mxu1  ;;  %1695 = vmatmul.mubr.msk.f32.vlgmr.msra.gmra.mxu0 %vm294_vm1, %v1640_v54 }
 0x1b4   :  { %v419_v57 = vpop.f32.mrf.mxu1 }
 0x1b5   :  { %1697 = vmatprep.mubr.msk.f32.mxu0 %vm294_vm1, %v419_v57 }
 0x1b6   :  { %v1646_v58 = vpop.f32.mrf.mxu1  ;;  %1698 = vmatmul.mubr.msk.f32.gmra.mxu0 %vm294_vm1, %v1643_v56 }
 0x1b8   :  { %v429_v59 = vpop.f32.mrf.mxu1 }
 0x1b9   :  { %1700 = vmatprep.mubr.msk.f32.mxu0 %vm294_vm1, %v429_v59 }
 0x1ba   :  { %v1649_v60 = vpop.f32.mrf.mxu1  ;;  %1701 = vmatmul.mubr.msk.f32.gmra.mxu0 %vm294_vm1, %v1646_v58 }
 0x1bc   :  { %v439_v61 = vpop.f32.mrf.mxu1 }
 0x1bd   :  { %1703 = vmatprep.mubr.msk.f32.mxu0 %vm294_vm1, %v439_v61 }
 0x1be   :  { %v1652_v62 = vpop.f32.mrf.mxu1  ;;  %1704 = vmatmul.mubr.msk.f32.gmra.mxu0 %vm294_vm1, %v1649_v60 }
 0x1c0   :  { %v449_v63 = vpop.f32.mrf.mxu1 }
 0x1c1   :  { %1706 = vmatprep.mubr.msk.f32.mxu0 %vm294_vm1, %v449_v63 }
 0x1c2   :  { %v1655_v0 = vpop.f32.mrf.mxu1  ;;  %1707 = vmatmul.mubr.msk.f32.gmra.mxu0 %vm294_vm1, %v1652_v62 }
 0x1c4   :  { %v459_v1 = vpop.f32.mrf.mxu1 }
 0x1c5   :  { %1709 = vmatprep.mubr.msk.f32.mxu0 %vm294_vm1, %v459_v1 }
 0x1c6   :  { %v1658_v2 = vpop.f32.mrf.mxu1  ;;  %1710 = vmatmul.mubr.msk.f32.gmra.mxu0 %vm294_vm1, %v1655_v0 }
 0x1c8   :  { %v469_v3 = vpop.f32.mrf.mxu1 }
 0x1c9   :  { %1712 = vmatprep.mubr.msk.f32.mxu0 %vm294_vm1, %v469_v3 }
 0x1ca   :  { %v1661_v4 = vpop.f32.mrf.mxu1  ;;  %1713 = vmatmul.mubr.msk.f32.gmra.mxu0 %vm294_vm1, %v1658_v2 }
 0x1cc   :  { %v479_v5 = vpop.f32.mrf.mxu1 }
 0x1cd   :  { %1715 = vmatprep.mubr.msk.f32.mxu0 %vm294_vm1, %v479_v5 }
 0x1ce   :  { %1716 = vmatmul.mubr.msk.f32.gmra.mxu0 %vm294_vm1, %v1661_v4 }
 0x272   :  { %v1696_v6 = vpop.f32.mrf.mxu0 }
 0x273   :  { %v2286_v14 = vadd.f32 %v1696_v6, %v489_v10 }
 0x274   :  { %v618_v8 = vpop.f32.mrf.mxu0 }
 0x275   :  { %v2277_v9 = vadd.f32 %v618_v8, %v488_v7 }
 0x276   :  { %v1699_v11 = vpop.f32.mrf.mxu0 }
 0x277   :  { %697 = vmax.xlane.f32.xlu0 %v2277_v9  ;;  %v2298_v20 = vadd.f32 %v1699_v11, %v491_v16 }
 0x278   :  { %v628_v13 = vpop.f32.mrf.mxu0 }
 0x279   :  { %v2288_v15 = vadd.f32 %v628_v13, %v490_v12 }
 0x27a   :  { %v1702_v17 = vpop.f32.mrf.mxu0 }
 0x27b   :  { %699 = vmax.xlane.f32.xlu0 %v2286_v14  ;;  %701 = vmax.xlane.f32.xlu1 %v2288_v15  ;;  %v2310_v26 = vadd.f32 %v1702_v17, %v493_v22 }
 0x27c   :  { %v638_v19 = vpop.f32.mrf.mxu0 }
 0x27d   :  { %v2300_v21 = vadd.f32 %v638_v19, %v492_v18 }
 0x27e   :  { %v1705_v23 = vpop.f32.mrf.mxu0 }
 0x27f   :  { %703 = vmax.xlane.f32.xlu1 %v2298_v20  ;;  %705 = vmax.xlane.f32.xlu0 %v2300_v21  ;;  %v2322_v32 = vadd.f32 %v1705_v23, %v495_v28 }
 0x280   :  { %v648_v25 = vpop.f32.mrf.mxu0 }
 0x281   :  { %v2312_v27 = vadd.f32 %v648_v25, %v494_v24 }
 0x282   :  { %v1708_v29 = vpop.f32.mrf.mxu0 }
 0x283   :  { %707 = vmax.xlane.f32.xlu1 %v2310_v26  ;;  %709 = vmax.xlane.f32.xlu0 %v2312_v27  ;;  %v2334_v38 = vadd.f32 %v1708_v29, %v497_v34 }
 0x284   :  { %v658_v31 = vpop.f32.mrf.mxu0 }
 0x285   :  { %v2324_v33 = vadd.f32 %v658_v31, %v496_v30 }
 0x286   :  { %v1711_v35 = vpop.f32.mrf.mxu0 }
 0x287   :  { %711 = vmax.xlane.f32.xlu1 %v2322_v32  ;;  %713 = vmax.xlane.f32.xlu0 %v2324_v33  ;;  %v2346_v44 = vadd.f32 %v1711_v35, %v499_v40 }
 0x288   :  { %v668_v37 = vpop.f32.mrf.mxu0 }
 0x289   :  { %v2336_v39 = vadd.f32 %v668_v37, %v498_v36 }
 0x28a   :  { %v1714_v41 = vpop.f32.mrf.mxu0 }
 0x28b   :  { %715 = vmax.xlane.f32.xlu1 %v2334_v38  ;;  %717 = vmax.xlane.f32.xlu0 %v2336_v39  ;;  %v2358_v50 = vadd.f32 %v1714_v41, %v501_v46 }
 0x28c   :  { %v678_v43 = vpop.f32.mrf.mxu0 }
 0x28d   :  { %v2348_v45 = vadd.f32 %v678_v43, %v500_v42 }
 0x28e   :  { %v1717_v47 = vpop.f32.mrf.mxu0 }
 0x28f   :  { %719 = vmax.xlane.f32.xlu1 %v2346_v44  ;;  %721 = vmax.xlane.f32.xlu0 %v2348_v45  ;;  %v2367_v53 = vadd.f32 %v1717_v47, %v503_v52 }
 0x290   :  { %v688_v49 = vpop.f32.mrf.mxu0 }
 0x291   :  { %v2360_v51 = vadd.f32 %v688_v49, %v502_v48 }
 0x293   :  { %723 = vmax.xlane.f32.xlu1 %v2358_v50  ;;  %725 = vmax.xlane.f32.xlu0 %v2360_v51 }
 0x297   :  { %727 = vmax.xlane.f32.xlu1 %v2367_v53 }
 0x300   :  { %v698_v54 = vpop.xlane.xlu0 %697 }
 0x301   :  { %v729_v55 = vsub.f32 %v2277_v9, %v698_v54  ;;  %v989_v54 = vld [vmem:[#allocation5 + $0x18] sm:$0xff] }
 0x302   :  { %1774 = vmatprep.subr.mxu1 %v989_v54 }
 0x303   :  { %v745_v56 = vmul.f32 1.442695, %v729_v55 }
 0x304   :  { %v700_v57 = vpop.xlane.xlu0 %699  ;;  %v702_v58 = vpop.xlane.xlu1 %701 }
 0x305   :  { %1860 = vpow2.f32 %v745_v56  ;;  %v730_v59 = vsub.f32 %v2286_v14, %v700_v57  ;;  %v731_v60 = vsub.f32 %v2288_v15, %v702_v58 }
 0x307   :  { %v747_v61 = vmul.f32 1.442695, %v730_v59  ;;  %v749_v62 = vmul.f32 1.442695, %v731_v60 }
 0x308   :  { %v704_v63 = vpop.xlane.xlu1 %703  ;;  %v706_v0 = vpop.xlane.xlu0 %705 }
 0x309   :  { %1862 = vpow2.f32 %v747_v61  ;;  %v732_v1 = vsub.f32 %v2298_v20, %v704_v63  ;;  %v733_v2 = vsub.f32 %v2300_v21, %v706_v0 }
 0x30a   :  { %1864 = vpow2.f32 %v749_v62 }
 0x30b   :  { %v751_v3 = vmul.f32 1.442695, %v732_v1  ;;  %v753_v4 = vmul.f32 1.442695, %v733_v2 }
 0x30c   :  { %v708_v5 = vpop.xlane.xlu1 %707  ;;  %v710_v6 = vpop.xlane.xlu0 %709 }
 0x30d   :  { %1866 = vpow2.f32 %v751_v3  ;;  %v734_v7 = vsub.f32 %v2310_v26, %v708_v5  ;;  %v735_v8 = vsub.f32 %v2312_v27, %v710_v6 }
 0x30e   :  { %1868 = vpow2.f32 %v753_v4 }
 0x30f   :  { %v755_v9 = vmul.f32 1.442695, %v734_v7  ;;  %v757_v10 = vmul.f32 1.442695, %v735_v8  ;;  %v988_v7 = vld [vmem:[#allocation5 + $0x10] sm:$0xff] }
 0x310   :  { %v712_v11 = vpop.xlane.xlu1 %711  ;;  %v714_v12 = vpop.xlane.xlu0 %713 }
 0x311   :  { %1870 = vpow2.f32 %v755_v9  ;;  %v736_v13 = vsub.f32 %v2322_v32, %v712_v11  ;;  %v737_v14 = vsub.f32 %v2324_v33, %v714_v12 }
 0x312   :  { %v2379_v15 = vpop.eup %1860  ;;  %1872 = vpow2.f32 %v757_v10  ;;  %v987_v10 = vld [vmem:[#allocation5 + $0x8] sm:$0xff] }
 0x313   :  { %v759_v16 = vmul.f32 1.442695, %v736_v13  ;;  %v761_v17 = vmul.f32 1.442695, %v737_v14  ;;  %777 = vadd.xlane.f32.xlu0 %v2379_v15 }
 0x314   :  { %v716_v18 = vpop.xlane.xlu1 %715  ;;  %v718_v19 = vpop.xlane.xlu0 %717 }
 0x315   :  { %1874 = vpow2.f32 %v759_v16  ;;  %v738_v20 = vsub.f32 %v2334_v38, %v716_v18  ;;  %v739_v21 = vsub.f32 %v2336_v39, %v718_v19 }
 0x316   :  { %v2384_v22 = vpop.eup %1862  ;;  %1876 = vpow2.f32 %v761_v17 }
 0x317   :  { %v2386_v23 = vpop.eup %1864  ;;  %v763_v24 = vmul.f32 1.442695, %v738_v20  ;;  %v765_v25 = vmul.f32 1.442695, %v739_v21  ;;  %779 = vadd.xlane.f32.xlu1 %v2384_v22 }
 0x318   :  { %781 = vadd.xlane.f32.xlu0 %v2386_v23  ;;  %v720_v26 = vpop.xlane.xlu1 %719  ;;  %v722_v27 = vpop.xlane.xlu0 %721 }
 0x319   :  { %1878 = vpow2.f32 %v763_v24  ;;  %v740_v28 = vsub.f32 %v2346_v44, %v720_v26  ;;  %v741_v29 = vsub.f32 %v2348_v45, %v722_v27 }
 0x31a   :  { %v2392_v30 = vpop.eup %1866  ;;  %1880 = vpow2.f32 %v765_v25 }
 0x31b   :  { %v2394_v31 = vpop.eup %1868  ;;  %v767_v32 = vmul.f32 1.442695, %v740_v28  ;;  %v769_v33 = vmul.f32 1.442695, %v741_v29  ;;  %783 = vadd.xlane.f32.xlu1 %v2392_v30 }
 0x31c   :  { %785 = vadd.xlane.f32.xlu0 %v2394_v31  ;;  %v724_v34 = vpop.xlane.xlu1 %723  ;;  %v726_v35 = vpop.xlane.xlu0 %725 }
 0x31d   :  { %1882 = vpow2.f32 %v767_v32  ;;  %v742_v36 = vsub.f32 %v2358_v50, %v724_v34  ;;  %v743_v37 = vsub.f32 %v2360_v51, %v726_v35 }
 0x31e   :  { %v2400_v38 = vpop.eup %1870  ;;  %1884 = vpow2.f32 %v769_v33 }
 0x31f   :  { %v2402_v39 = vpop.eup %1872  ;;  %v771_v40 = vmul.f32 1.442695, %v742_v36  ;;  %v773_v41 = vmul.f32 1.442695, %v743_v37  ;;  %787 = vadd.xlane.f32.xlu1 %v2400_v38 }
 0x320   :  { %789 = vadd.xlane.f32.xlu0 %v2402_v39  ;;  %v728_v42 = vpop.xlane.xlu1 %727 }
 0x321   :  { %1886 = vpow2.f32 %v771_v40  ;;  %v744_v43 = vsub.f32 %v2367_v53, %v728_v42 }
 0x322   :  { %v2407_v44 = vpop.eup %1874  ;;  %1888 = vpow2.f32 %v773_v41 }
 0x323   :  { %v2409_v45 = vpop.eup %1876  ;;  %v775_v46 = vmul.f32 1.442695, %v744_v43  ;;  %791 = vadd.xlane.f32.xlu1 %v2407_v44 }
 0x324   :  { %793 = vadd.xlane.f32.xlu0 %v2409_v45 }
 0x325   :  { %1890 = vpow2.f32 %v775_v46 }
 0x326   :  { %v2413_v47 = vpop.eup %1878 }
 0x327   :  { %v2415_v48 = vpop.eup %1880  ;;  %795 = vadd.xlane.f32.xlu1 %v2413_v47 }
 0x328   :  { %797 = vadd.xlane.f32.xlu0 %v2415_v48 }
 0x32a   :  { %v2419_v49 = vpop.eup %1882 }
 0x32b   :  { %v2421_v50 = vpop.eup %1884  ;;  %799 = vadd.xlane.f32.xlu1 %v2419_v49 }
 0x32c   :  { %801 = vadd.xlane.f32.xlu0 %v2421_v50 }
 0x32e   :  { %v2425_v51 = vpop.eup %1886 }
 0x32f   :  { %v2427_v52 = vpop.eup %1888  ;;  %803 = vadd.xlane.f32.xlu1 %v2425_v51 }
 0x330   :  { %805 = vadd.xlane.f32.xlu0 %v2427_v52 }
 0x332   :  { %v2431_v53 = vpop.eup %1890 }
 0x333   :  { %807 = vadd.xlane.f32.xlu1 %v2431_v53 }
 0x39c   :  { %v778_v55 = vpop.xlane.xlu0 %777 }
 0x39d   :  { %1892 = vrcp.f32 %v778_v55 }
 0x3a0   :  { %v780_v56 = vpop.xlane.xlu1 %779 }
 0x3a1   :  { %1894 = vrcp.f32 %v780_v56  ;;  %v782_v57 = vpop.xlane.xlu0 %781 }
 0x3a2   :  { %1896 = vrcp.f32 %v782_v57 }
 0x3a4   :  { %v784_v58 = vpop.xlane.xlu1 %783 }
 0x3a5   :  { %1898 = vrcp.f32 %v784_v58  ;;  %v786_v59 = vpop.xlane.xlu0 %785  ;;  %v2015_v58 = vmov 0.0  }
 0x3a6   :  { %1900 = vrcp.f32 %v786_v59  ;;  %1806 = vmatprep.subr.mxu0 %v2015_v58  ;;  %1838 = vmatprep.mubr.msk.f32.mxu0 %vm2016_vm2, %v2015_v58  ;;  %v1278_v59 = vld [vmem:[#allocation7 + $0x18] sm:$0xff] }
 0x3a8   :  { %v788_v60 = vpop.xlane.xlu1 %787 }
 0x3a9   :  { %1902 = vrcp.f32 %v788_v60  ;;  %v790_v61 = vpop.xlane.xlu0 %789  ;;  %v1277_v60 = vld [vmem:[#allocation7 + $0x10] sm:$0xff] }
 0x3aa   :  { %v1893_v62 = vpop.eup %1892  ;;  %1904 = vrcp.f32 %v790_v61  ;;  %v1276_v61 = vld [vmem:[#allocation7 + $0x8] sm:$0xff] }
 0x3ab   :  { %v825_v63 = vmul.f32 %v1893_v62, %v2379_v15  ;;  %v986_v15 = vld [vmem:[#allocation5] sm:$0xff] }
 0x3ac   :  { %v792_v0 = vpop.xlane.xlu1 %791  ;;  %v1275_v62 = vld [vmem:[#allocation7] sm:$0xff] }
 0x3ad   :  { %1906 = vrcp.f32 %v792_v0  ;;  %v794_v1 = vpop.xlane.xlu0 %793  ;;  %1750 = vmatprep.mubr.f32.mxu1 %v825_v63 }
 0x3ae   :  { %v1895_v2 = vpop.eup %1894  ;;  %1908 = vrcp.f32 %v794_v1 }
 0x3af   :  { %v1897_v3 = vpop.eup %1896  ;;  %v826_v4 = vmul.f32 %v1895_v2, %v2384_v22 }
 0x3b0   :  { %v796_v5 = vpop.xlane.xlu1 %795  ;;  %v827_v6 = vmul.f32 %v1897_v3, %v2386_v23 }
 0x3b1   :  { %1910 = vrcp.f32 %v796_v5  ;;  %v798_v8 = vpop.xlane.xlu0 %797  ;;  %1751 = vmatmul.mubr.f32.vlgmr.msra.gmra.mxu1 %v826_v4 }
 0x3b2   :  { %v1899_v9 = vpop.eup %1898  ;;  %1912 = vrcp.f32 %v798_v8  ;;  %1753 = vmatprep.mubr.f32.mxu1 %v827_v6  ;;  %1775 = vmatpush3.msra.mxu1 %v989_v54 }
 0x3b3   :  { %v1901_v11 = vpop.eup %1900  ;;  %v828_v12 = vmul.f32 %v1899_v9, %v2392_v30  ;;  %1776 = vmatprep.subr.mxu1 %v988_v7 }
 0x3b4   :  { %v800_v13 = vpop.xlane.xlu1 %799  ;;  %v829_v14 = vmul.f32 %v1901_v11, %v2394_v31  ;;  %1777 = vmatpush3.msra.mxu1 %v988_v7 }
 0x3b5   :  { %1914 = vrcp.f32 %v800_v13  ;;  %v802_v16 = vpop.xlane.xlu0 %801  ;;  %1754 = vmatmul.mubr.f32.gmra.mxu1 %v828_v12  ;;  %1778 = vmatprep.subr.mxu1 %v987_v10  ;;  %v1442_v13 = vld [vmem:[%s2509_s2 + $0x1] ss:$0 sm:$0xff] }
 0x3b6   :  { %v1903_v17 = vpop.eup %1902  ;;  %1916 = vrcp.f32 %v802_v16  ;;  %1756 = vmatprep.mubr.f32.mxu1 %v829_v14  ;;  %1779 = vmatpush3.msra.mxu1 %v987_v10 }
 0x3b7   :  { %v1905_v18 = vpop.eup %1904  ;;  %v830_v19 = vmul.f32 %v1903_v17, %v2400_v38  ;;  %1780 = vmatprep.subr.mxu1 %v986_v15 }
 0x3b8   :  { %v804_v20 = vpop.xlane.xlu1 %803  ;;  %v831_v21 = vmul.f32 %v1905_v18, %v2402_v39  ;;  %1781 = vmatpush3.msra.mxu1 %v986_v15 }
 0x3b9   :  { %1918 = vrcp.f32 %v804_v20  ;;  %v806_v22 = vpop.xlane.xlu0 %805  ;;  %1757 = vmatmul.mubr.f32.gmra.mxu1 %v830_v19  ;;  %1841 = vmatprep.subr.mxu1 %v2015_v58 }
 0x3ba   :  { %v1907_v23 = vpop.eup %1906  ;;  %1920 = vrcp.f32 %v806_v22  ;;  %1759 = vmatprep.mubr.f32.mxu1 %v831_v21 }
 0x3bb   :  { %v1909_v24 = vpop.eup %1908  ;;  %v832_v25 = vmul.f32 %v1907_v23, %v2407_v44 }
 0x3bc   :  { %v808_v26 = vpop.xlane.xlu1 %807  ;;  %v833_v27 = vmul.f32 %v1909_v24, %v2409_v45 }
 0x3bd   :  { %1922 = vrcp.f32 %v808_v26  ;;  %1760 = vmatmul.mubr.f32.gmra.mxu1 %v832_v25 }
 0x3be   :  { %v1911_v28 = vpop.eup %1910  ;;  %1762 = vmatprep.mubr.f32.mxu1 %v833_v27 }
 0x3bf   :  { %v1913_v29 = vpop.eup %1912  ;;  %v834_v30 = vmul.f32 %v1911_v28, %v2413_v47 }
 0x3c0   :  { %v835_v31 = vmul.f32 %v1913_v29, %v2415_v48 }
 0x3c1   :  { %1763 = vmatmul.mubr.f32.gmra.mxu1 %v834_v30 }
 0x3c2   :  { %v1915_v32 = vpop.eup %1914  ;;  %1765 = vmatprep.mubr.f32.mxu1 %v835_v31 }
 0x3c3   :  { %v1917_v33 = vpop.eup %1916  ;;  %v836_v34 = vmul.f32 %v1915_v32, %v2419_v49 }
 0x3c4   :  { %v837_v35 = vmul.f32 %v1917_v33, %v2421_v50 }
 0x3c5   :  { %1766 = vmatmul.mubr.f32.gmra.mxu1 %v836_v34 }
 0x3c6   :  { %v1919_v36 = vpop.eup %1918  ;;  %1768 = vmatprep.mubr.f32.mxu1 %v837_v35 }
 0x3c7   :  { %v1921_v37 = vpop.eup %1920  ;;  %v838_v38 = vmul.f32 %v1919_v36, %v2425_v51 }
 0x3c8   :  { %v839_v39 = vmul.f32 %v1921_v37, %v2427_v52 }
 0x3c9   :  { %1769 = vmatmul.mubr.f32.gmra.mxu1 %v838_v38 }
 0x3ca   :  { %v1923_v40 = vpop.eup %1922  ;;  %1771 = vmatprep.mubr.f32.mxu1 %v839_v39 }
 0x3cb   :  { %v840_v41 = vmul.f32 %v1923_v40, %v2431_v53 }
 0x3cd   :  { %1772 = vmatmul.mubr.f32.gmra.mxu1 %v840_v41 }
 0x471   :  { %v1752_v42 = vpop.f32.mrf.mxu1 }
 0x473   :  { %v907_v43 = vpop.f32.mrf.mxu1 }
 0x474   :  { %1782 = vmatprep.mubr.msk.f32.mxu1 %vm294_vm1, %v907_v43 }
 0x475   :  { %v1755_v44 = vpop.f32.mrf.mxu1  ;;  %1783 = vmatmul.mubr.msk.f32.vlgmr.msra.gmra.mxu1 %vm294_vm1, %v1752_v42 }
 0x476   :  { %1842 = vmatpush3.msra.mxu1 %v1278_v59 }
 0x477   :  { %v917_v45 = vpop.f32.mrf.mxu1  ;;  %1843 = vmatprep.subr.mxu1 %v2015_v58 }
 0x478   :  { %1785 = vmatprep.mubr.msk.f32.mxu1 %vm294_vm1, %v917_v45  ;;  %1844 = vmatpush3.msra.mxu1 %v1277_v60 }
 0x479   :  { %v1758_v46 = vpop.f32.mrf.mxu1  ;;  %1786 = vmatmul.mubr.msk.f32.gmra.mxu1 %vm294_vm1, %v1755_v44  ;;  %1845 = vmatprep.subr.mxu1 %v2015_v58 }
 0x47a   :  { %1846 = vmatpush3.msra.mxu1 %v1276_v61 }
 0x47b   :  { %v927_v47 = vpop.f32.mrf.mxu1  ;;  %1847 = vmatprep.subr.mxu1 %v2015_v58 }
 0x47c   :  { %1788 = vmatprep.mubr.msk.f32.mxu1 %vm294_vm1, %v927_v47  ;;  %1848 = vmatpush3.msra.mxu1 %v1275_v62 }
 0x47d   :  { %v1761_v48 = vpop.f32.mrf.mxu1  ;;  %1789 = vmatmul.mubr.msk.f32.gmra.mxu1 %vm294_vm1, %v1758_v46 }
 0x47f   :  { %v937_v49 = vpop.f32.mrf.mxu1 }
 0x480   :  { %1791 = vmatprep.mubr.msk.f32.mxu1 %vm294_vm1, %v937_v49 }
 0x481   :  { %v1764_v50 = vpop.f32.mrf.mxu1  ;;  %1792 = vmatmul.mubr.msk.f32.gmra.mxu1 %vm294_vm1, %v1761_v48  ;;  %v1204_v48 = vld [vmem:[%s2515_s8] sm:$0xff]  ;;  %s1984_s8 = scalar_lea.vmem %s1368_s22, 128 }
 0x482   :  { %p1985_p1 = scmp.ne.s32.totalorder %s1368_s22, %s1984_s8  ;;  %p1990_p3 = scmp.lt.s32.totalorder %s1984_s8, %s1984_s8 }
 0x483   :  { %v947_v51 = vpop.f32.mrf.mxu1 }
 0x484   :  { %1794 = vmatprep.mubr.msk.f32.mxu1 %vm294_vm1, %v947_v51  ;;  %v1459_v51 = vld [vmem:[%s2513_s6] ss:$0 sm:$0xff]  ;;  %p1991_p4 = por %p1990_p3, %p1989_p2 }
 0x485   :  { %v1767_v52 = vpop.f32.mrf.mxu1  ;;  %1795 = vmatmul.mubr.msk.f32.gmra.mxu1 %vm294_vm1, %v1764_v50 }
 0x486   :  { %p1992_p5 = pnand %p1991_p4, %p1985_p1 }
 0x487   :  { %v957_v53 = vpop.f32.mrf.mxu1 }
 0x488   :  { %1797 = vmatprep.mubr.msk.f32.mxu1 %vm294_vm1, %v957_v53 }
 0x489   :  { %v1770_v54 = vpop.f32.mrf.mxu1  ;;  %1798 = vmatmul.mubr.msk.f32.gmra.mxu1 %vm294_vm1, %v1767_v52 }
 0x48b   :  { %v967_v55 = vpop.f32.mrf.mxu1 }
 0x48c   :  { %1800 = vmatprep.mubr.msk.f32.mxu1 %vm294_vm1, %v967_v55 }
 0x48d   :  { %v1773_v56 = vpop.f32.mrf.mxu1  ;;  %1801 = vmatmul.mubr.msk.f32.gmra.mxu1 %vm294_vm1, %v1770_v54 }
 0x48f   :  { %v977_v57 = vpop.f32.mrf.mxu1 }
 0x490   :  { %1803 = vmatprep.mubr.msk.f32.mxu1 %vm294_vm1, %v977_v57 }
 0x491   :  { %1804 = vmatmul.mubr.msk.f32.gmra.mxu1 %vm294_vm1, %v1773_v56 }
 0x492   :  { %1849 = vmatprep.mubr.msk.f32.mxu1 %vm2016_vm2, %v2015_v58 }
 0x535   :  { %v2473_v63 = vpop.f32.mrf.mxu1 }
 0x536   :  { %v1115_v42 = vadd.f32 %v2473_v63, %v1442_v13 }
 0x537   :  { %v2475_v0 = vpop.f32.mrf.mxu1 }
 0x538   :  { %v1110_v44 = vadd.f32 %v1442_v13, %v2475_v0  ;;  %v1189_v46 = vmax.f32 %v1115_v42, 0.0 }
 0x539   :  { %v1787_v1 = vpop.f32.mrf.mxu1 }
 0x53a   :  { %v1125_v38 = vadd.f32 %v1787_v1, %v1442_v13  ;;  %v1188_v47 = vmax.f32 %v1110_v44, 0.0 }
 0x53b   :  { %v1119_v2 = vpop.f32.mrf.mxu1 }
 0x53c   :  { %v1120_v40 = vadd.f32 %v1442_v13, %v1119_v2  ;;  %v1191_v43 = vmax.f32 %v1125_v38, 0.0 }
 0x53d   :  { %v1790_v3 = vpop.f32.mrf.mxu1 }
 0x53e   :  { %v1135_v34 = vadd.f32 %v1790_v3, %v1442_v13  ;;  %v1190_v45 = vmax.f32 %v1120_v40, 0.0 }
 0x53f   :  { %v1129_v4 = vpop.f32.mrf.mxu1 }
 0x540   :  { %v1130_v36 = vadd.f32 %v1442_v13, %v1129_v4  ;;  %v1193_v39 = vmax.f32 %v1135_v34, 0.0 }
 0x541   :  { %v1793_v5 = vpop.f32.mrf.mxu1 }
 0x542   :  { %v1145_v30 = vadd.f32 %v1793_v5, %v1442_v13  ;;  %v1192_v41 = vmax.f32 %v1130_v36, 0.0 }
 0x543   :  { %v1139_v6 = vpop.f32.mrf.mxu1 }
 0x544   :  { %v1140_v32 = vadd.f32 %v1442_v13, %v1139_v6  ;;  %v1195_v35 = vmax.f32 %v1145_v30, 0.0 }
 0x545   :  { %v1796_v7 = vpop.f32.mrf.mxu1 }
 0x546   :  { %v1155_v26 = vadd.f32 %v1796_v7, %v1442_v13  ;;  %v1194_v37 = vmax.f32 %v1140_v32, 0.0 }
 0x547   :  { %v1149_v8 = vpop.f32.mrf.mxu1 }
 0x548   :  { %v1150_v28 = vadd.f32 %v1442_v13, %v1149_v8  ;;  %v1197_v31 = vmax.f32 %v1155_v26, 0.0 }
 0x549   :  { %v1799_v9 = vpop.f32.mrf.mxu1 }
 0x54a   :  { %v1165_v22 = vadd.f32 %v1799_v9, %v1442_v13  ;;  %v1196_v33 = vmax.f32 %v1150_v28, 0.0 }
 0x54b   :  { %v1159_v10 = vpop.f32.mrf.mxu1 }
 0x54c   :  { %v1160_v24 = vadd.f32 %v1442_v13, %v1159_v10  ;;  %v1199_v27 = vmax.f32 %v1165_v22, 0.0 }
 0x54d   :  { %v1802_v11 = vpop.f32.mrf.mxu1 }
 0x54e   :  { %v1175_v17 = vadd.f32 %v1802_v11, %v1442_v13  ;;  %v1198_v29 = vmax.f32 %v1160_v24, 0.0 }
 0x54f   :  { %v1169_v12 = vpop.f32.mrf.mxu1 }
 0x550   :  { %v1170_v20 = vadd.f32 %v1442_v13, %v1169_v12  ;;  %v1201_v23 = vmax.f32 %v1175_v17, 0.0 }
 0x551   :  { %v1805_v14 = vpop.f32.mrf.mxu1 }
 0x552   :  { %v1185_v15 = vadd.f32 %v1805_v14, %v1442_v13  ;;  %v1200_v25 = vmax.f32 %v1170_v20, 0.0 }
 0x553   :  { %v1179_v16 = vpop.f32.mrf.mxu1 }
 0x554   :  { %v1203_v18 = vmax.f32 %v1185_v15, 0.0  ;;  %v1180_v19 = vadd.f32 %v1442_v13, %v1179_v16 }
 0x556   :  { %v1202_v21 = vmax.f32 %v1180_v19, 0.0  ;;  %1807 = vmatpush3.msra.mxu0 %v1203_v18 }
 0x557   :  { %1808 = vmatprep.subr.mxu0 %v2015_v58 }
 0x558   :  { %1809 = vmatpush3.msra.mxu0 %v1202_v21 }
 0x559   :  { %1810 = vmatprep.subr.mxu0 %v2015_v58 }
 0x55a   :  { %1811 = vmatpush3.msra.mxu0 %v1201_v23 }
 0x55b   :  { %1812 = vmatprep.subr.mxu0 %v2015_v58 }
 0x55c   :  { %1813 = vmatpush3.msra.mxu0 %v1200_v25 }
 0x55d   :  { %1814 = vmatprep.subr.mxu0 %v2015_v58 }
 0x55e   :  { %1815 = vmatpush3.msra.mxu0 %v1199_v27 }
 0x55f   :  { %1816 = vmatprep.subr.mxu0 %v2015_v58 }
 0x560   :  { %1817 = vmatpush3.msra.mxu0 %v1198_v29 }
 0x561   :  { %1818 = vmatprep.subr.mxu0 %v2015_v58 }
 0x562   :  { %1819 = vmatpush3.msra.mxu0 %v1197_v31 }
 0x563   :  { %1820 = vmatprep.subr.mxu0 %v2015_v58 }
 0x564   :  { %1821 = vmatpush3.msra.mxu0 %v1196_v33 }
 0x565   :  { %1822 = vmatprep.subr.mxu0 %v2015_v58 }
 0x566   :  { %1823 = vmatpush3.msra.mxu0 %v1195_v35 }
 0x567   :  { %1824 = vmatprep.subr.mxu0 %v2015_v58 }
 0x568   :  { %1825 = vmatpush3.msra.mxu0 %v1194_v37 }
 0x569   :  { %1826 = vmatprep.subr.mxu0 %v2015_v58 }
 0x56a   :  { %1827 = vmatpush3.msra.mxu0 %v1193_v39 }
 0x56b   :  { %1828 = vmatprep.subr.mxu0 %v2015_v58 }
 0x56c   :  { %1829 = vmatpush3.msra.mxu0 %v1192_v41 }
 0x56d   :  { %1830 = vmatprep.subr.mxu0 %v2015_v58 }
 0x56e   :  { %1831 = vmatpush3.msra.mxu0 %v1191_v43 }
 0x56f   :  { %1832 = vmatprep.subr.mxu0 %v2015_v58 }
 0x570   :  { %1833 = vmatpush3.msra.mxu0 %v1190_v45 }
 0x571   :  { %1834 = vmatprep.subr.mxu0 %v2015_v58 }
 0x572   :  { %1835 = vmatpush3.msra.mxu0 %v1189_v46 }
 0x573   :  { %1836 = vmatprep.subr.mxu0 %v2015_v58 }
 0x574   :  { %1837 = vmatpush3.msra.mxu0 %v1188_v47 }
 0x575   :  { %1839 = vmatmul.mubr.f32.vlgmr.msra.gmra.mxu0 %v1204_v48 }
 0x635   :  { %v1271_v49 = vpop.f32.mrf.mxu0 }
 0x636   :  { %1850 = vmatmul.mubr.msk.f32.vlgmr.msra.gmra.mxu1 %vm294_vm1, %v1271_v49 }
 0x637   :  { %v1840_v50 = vpop.f32.mrf.mxu0 }
 0x6f6   :  { %v1355_v52 = vpop.f32.mrf.mxu1 }
 0x6f7   :  { %v1356_v53 = vadd.f32 %v1459_v51, %v1355_v52 }
 0x6f8   :  { %v1851_v54 = vpop.f32.mrf.mxu1 }
 0x6f9   :  { %v1359_v55 = vmax.f32 %v1356_v53, 0.0 }
 0x6fb   :  { %1360 = vst [vmem:[#allocation8] sm:$0xff] %v1359_v55 }
 0x6fc   :  { %1995 = shalt.err (!%p1992_p5)
}
 0x6fd   :  { %1370 = dma.vmem_to_hbm [thread:$0]  %s1368_s22, 128, %s2516_s9, [#allocation4]  }
 0x6fe   :  { %2008 = dma.done.wait [#allocation4], 128  }
 0x6ff   :  { %2009 = vsyncadd [#allocation4], 4294967168 }
 0x700   :  { %1374 = vsyncpa [#allocation3], 1 }
 0x701   :  { %1375 = vsyncpa [#allocation6], 1 }
 0x702   :  { %1376 = vsyncpa [#allocation4], 1 }

</bundles_post_ra>
